<compile_context>
chip_gen: v7x
topology: tpu7x:2x2x1
jax: 0.10.0
libtpu: 0.0.40
codegen_flags: <defaults>
</compile_context>

<pallas_src>
import functools

import jax
import jax.numpy as jnp
from jax.experimental import pallas as pl
from jax.experimental.pallas import tpu as pltpu


# ---------------------------------------------------------------------------
# Pallas kernel factory: fused LayerNorm over the channel (sublane) axis.
#   x_ref : (TB, C, TW)   TB batch elems, full channels, lane-dense spatial tile
#   w_ref : (C, 1)        scale (resident, constant block index)
#   b_ref : (C, 1)        bias  (only present when with_bias=True)
#   o_ref : (TB, C, TW)
# ---------------------------------------------------------------------------
def _make_layernorm_kernel(eps, with_bias):
    def kernel(x_ref, w_ref, *rest):
        if with_bias:
            b_ref, o_ref = rest
        else:
            (o_ref,) = rest

        x = x_ref[...].astype(jnp.float32)                 # (TB, C, TW)
        inv_c = 1.0 / x.shape[1]

        # One pass over the tile: sum and sum-of-squares together (shortens
        # the XLU-reduce -> VPU-subtract -> XLU-reduce dependency chain).
        s1 = jnp.sum(x, axis=1, keepdims=True)             # (TB, 1, TW)
        s2 = jnp.sum(x * x, axis=1, keepdims=True)         # (TB, 1, TW)
        mu = s1 * inv_c
        var = jnp.maximum(s2 * inv_c - mu * mu, 0.0)       # unbiased=False
        inv = jax.lax.rsqrt(var + eps)                     # (TB, 1, TW)

        w = w_ref[...].astype(jnp.float32)[None]           # (1, C, 1)
        if with_bias:
            b = b_ref[...].astype(jnp.float32)[None]       # (1, C, 1)
            y = (x - mu) * inv * w + b
        else:
            # BiasFree: variance is about the mean, but x itself is NOT centered.
            y = x * inv * w
        o_ref[...] = y.astype(o_ref.dtype)

    return kernel


# ---------------------------------------------------------------------------
# Tile selection: VMEM-budget-driven spatial tile + optional batch folding.
# ---------------------------------------------------------------------------
_BYTES_BUDGET = 12 * 1024 * 1024   # in+out blocks, double-buffered
_MAX_TW = 8192


def _choose_tiles(b, c, hw, itemsize):
    hw128 = max(128, pl.cdiv(hw, 128) * 128)
    # Per-step bytes ~ 2(double-buffer) * 2(in+out) * C * TW * itemsize.
    max_tw = max(128, (_BYTES_BUDGET // (4 * c * itemsize)) // 128 * 128)
    tw = min(_MAX_TW, hw128, max_tw)

    # Don't shrink the whole grid to a single step if the image can be split
    # (keeps v7x megacore busy; no-op on v5e/v6e).
    n_sp = pl.cdiv(hw, tw)
    while b * n_sp < 2 and tw > 128:
        tw = max(128, (tw // 2) // 128 * 128)
        n_sp = pl.cdiv(hw, tw)

    # Small-image path: fold batch elems into the block to amortize per-step
    # overhead, keeping >= 2 grid steps when possible.
    tb = 1
    if n_sp == 1 and b > 2:
        max_tb = max(1, _BYTES_BUDGET // (4 * c * tw * itemsize))
        for cand in range(min(b // 2, max_tb), 1, -1):
            if b % cand == 0:
                tb = cand
                break
    return tb, tw


# ---------------------------------------------------------------------------
# Public wrapper: NCHW in, NCHW out (matches the PyTorch module).
# ---------------------------------------------------------------------------
def layernorm_nchw(x, weight, bias=None, *, eps=1e-5, with_bias=True):
    b, c, h, w = x.shape
    hw = h * w
    tb, tw = _choose_tiles(b, c, hw, x.dtype.itemsize)

    # Free reshape (no transpose, no HBM copy); no padding and no output
    # slice — Pallas masks the ragged last spatial block.
    x3 = x.reshape(b, c, hw)
    w2 = weight.reshape(c, 1)

    grid = (b // tb, pl.cdiv(hw, tw))
    kernel = _make_layernorm_kernel(eps, with_bias)

    x_spec = pl.BlockSpec((tb, c, tw), lambda bi, si: (bi, 0, si))
    p_spec = pl.BlockSpec((c, 1), lambda bi, si: (0, 0))
    in_specs = [x_spec, p_spec]
    args = [x3, w2]
    if with_bias:
        in_specs.append(p_spec)
        args.append(bias.reshape(c, 1))

    out = pl.pallas_call(
        kernel,
        out_shape=jax.ShapeDtypeStruct((b, c, hw), x.dtype),
        grid_spec=pltpu.PrefetchScalarGridSpec(
            num_scalar_prefetch=0,
            grid=grid,
            in_specs=in_specs,
            out_specs=pl.BlockSpec((tb, c, tw), lambda bi, si: (bi, 0, si)),
        ),
        compiler_params=pltpu.CompilerParams(
            # Both axes independent -> megacore sharding on v7x.
            dimension_semantics=("parallel", "parallel"),
            # Block footprint is budgeted to ~12 MiB; 32 MiB is safe on
            # v5e/v6e (128 MiB physical) and v7x (64 MiB physical).
            vmem_limit_bytes=32 * 1024 * 1024,
        ),
    )(*args)

    return out.reshape(b, c, h, w)


# ---------------------------------------------------------------------------
# Pure-JAX reference (mirrors the PyTorch module exactly).
# ---------------------------------------------------------------------------
def layernorm_ref(x, weight, bias=None, *, eps=1e-5, with_bias=True):
    b, c, h, w = x.shape
    x3 = jnp.transpose(x.reshape(b, c, h * w), (0, 2, 1))   # (b, hw, c)
    mu = jnp.mean(x3, axis=-1, keepdims=True)
    var = jnp.mean((x3 - mu) ** 2, axis=-1, keepdims=True)
    if with_bias:
        y = (x3 - mu) / jnp.sqrt(var + eps) * weight + bias
    else:
        y = x3 / jnp.sqrt(var + eps) * weight
    return jnp.transpose(y, (0, 2, 1)).reshape(b, c, h, w)


if __name__ == "__main__":
    batch, dim, H, W = 2, 32, 16, 16

    key = jax.random.PRNGKey(0)
    kx, kw, kb = jax.random.split(key, 3)
    x = jax.random.normal(kx, (batch, dim, H, W), dtype=jnp.float32)
    weight = 1.0 + 0.1 * jax.random.normal(kw, (dim,), dtype=jnp.float32)
    bias = 0.1 * jax.random.normal(kb, (dim,), dtype=jnp.float32)

    ln_withbias = jax.jit(functools.partial(layernorm_nchw, with_bias=True))
    ln_biasfree = jax.jit(
        functools.partial(layernorm_nchw, bias=None, with_bias=False))

    out_wb = ln_withbias(x, weight, bias)
    out_bf = ln_biasfree(x, weight)
    jax.block_until_ready((out_wb, out_bf))

    assert out_wb.shape == (batch, dim, H, W), out_wb.shape
    assert out_bf.shape == (batch, dim, H, W), out_bf.shape

    ref_wb = layernorm_ref(x, weight, bias, with_bias=True)
    ref_bf = layernorm_ref(x, weight, with_bias=False)

    assert jnp.allclose(out_wb, ref_wb, atol=1e-4, rtol=1e-4), (
        float(jnp.max(jnp.abs(out_wb - ref_wb))))
    assert jnp.allclose(out_bf, ref_bf, atol=1e-4, rtol=1e-4), (
        float(jnp.max(jnp.abs(out_bf - ref_bf))))

    print("KERNEL_OK")
</pallas_src>

<mosaic_0001>
module attributes {stable_mosaic.version = 11 : i64} {
  func.func @kernel(%arg0: i32, %arg1: i32, %arg2: memref<1x32x256xf32, #tpu.memory_space<vmem>>, %arg3: memref<32x1xf32, #tpu.memory_space<vmem>>, %arg4: memref<32x1xf32, #tpu.memory_space<vmem>>, %arg5: memref<1x32x256xf32, #tpu.memory_space<vmem>>) attributes {dimension_semantics = [#tpu.dimension_semantics<parallel>, #tpu.dimension_semantics<parallel>], iteration_bounds = array<i64: 2, 1>, scalar_prefetch = 0 : i64, scratch_operands = 0 : i64, tpu.core_type = #tpu.core_type<tc>, window_params = [{transform_indices = @transform_0, window_bounds = array<i64: 1, 32, 256>}, {pipeline_mode = #tpu.pipeline_mode<synchronous>, transform_indices = @transform_1, window_bounds = array<i64: 32, 1>}, {pipeline_mode = #tpu.pipeline_mode<synchronous>, transform_indices = @transform_2, window_bounds = array<i64: 32, 1>}, {transform_indices = @transform_3, window_bounds = array<i64: 1, 32, 256>}]} {
    %c0 = arith.constant 0 : index
    %c0_0 = arith.constant 0 : index
    %c0_1 = arith.constant 0 : index
    %0 = vector.load %arg2[%c0, %c0_0, %c0_1] : memref<1x32x256xf32, #tpu.memory_space<vmem>>, vector<1x32x256xf32>
    %cst = arith.constant dense<0.000000e+00> : vector<1x256xf32>
    %1 = vector.multi_reduction <add>, %0, %cst [1] : vector<1x32x256xf32> to vector<1x256xf32>
    %2 = vector.shape_cast %1 : vector<1x256xf32> to vector<1x1x256xf32>
    %3 = arith.mulf %0, %0 : vector<1x32x256xf32>
    %cst_2 = arith.constant dense<0.000000e+00> : vector<1x256xf32>
    %4 = vector.multi_reduction <add>, %3, %cst_2 [1] : vector<1x32x256xf32> to vector<1x256xf32>
    %5 = vector.shape_cast %4 : vector<1x256xf32> to vector<1x1x256xf32>
    %cst_3 = arith.constant 3.125000e-02 : f32
    %6 = vector.broadcast %cst_3 : f32 to vector<1x1x256xf32>
    %7 = arith.mulf %2, %6 : vector<1x1x256xf32>
    %cst_4 = arith.constant 3.125000e-02 : f32
    %8 = vector.broadcast %cst_4 : f32 to vector<1x1x256xf32>
    %9 = arith.mulf %5, %8 : vector<1x1x256xf32>
    %10 = arith.mulf %7, %7 : vector<1x1x256xf32>
    %11 = arith.subf %9, %10 : vector<1x1x256xf32>
    %cst_5 = arith.constant 0.000000e+00 : f32
    %12 = vector.broadcast %cst_5 : f32 to vector<1x1x256xf32>
    %13 = arith.maximumf %11, %12 : vector<1x1x256xf32>
    %cst_6 = arith.constant 9.99999974E-6 : f32
    %14 = vector.broadcast %cst_6 : f32 to vector<1x1x256xf32>
    %15 = arith.addf %13, %14 : vector<1x1x256xf32>
    %16 = math.rsqrt %15 : vector<1x1x256xf32>
    %c0_7 = arith.constant 0 : index
    %c0_8 = arith.constant 0 : index
    %17 = vector.load %arg3[%c0_7, %c0_8] : memref<32x1xf32, #tpu.memory_space<vmem>>, vector<32x1xf32>
    %18 = vector.shape_cast %17 : vector<32x1xf32> to vector<1x32x1xf32>
    %c0_9 = arith.constant 0 : index
    %c0_10 = arith.constant 0 : index
    %19 = vector.load %arg4[%c0_9, %c0_10] : memref<32x1xf32, #tpu.memory_space<vmem>>, vector<32x1xf32>
    %20 = vector.shape_cast %19 : vector<32x1xf32> to vector<1x32x1xf32>
    %21 = vector.broadcast %7 : vector<1x1x256xf32> to vector<1x32x256xf32>
    %22 = arith.subf %0, %21 : vector<1x32x256xf32>
    %23 = vector.broadcast %16 : vector<1x1x256xf32> to vector<1x32x256xf32>
    %24 = arith.mulf %22, %23 : vector<1x32x256xf32>
    %25 = vector.broadcast %18 : vector<1x32x1xf32> to vector<1x32x256xf32>
    %26 = arith.mulf %24, %25 : vector<1x32x256xf32>
    %27 = vector.broadcast %20 : vector<1x32x1xf32> to vector<1x32x256xf32>
    %28 = arith.addf %26, %27 : vector<1x32x256xf32>
    %c0_11 = arith.constant 0 : index
    %c0_12 = arith.constant 0 : index
    %c0_13 = arith.constant 0 : index
    %29 = vector.load %arg5[%c0_11, %c0_12, %c0_13] : memref<1x32x256xf32, #tpu.memory_space<vmem>>, vector<1x32x256xf32>
    tpu.vector_store %arg5[%c0_11, %c0_12, %c0_13], %28 {strides = array<i32>} : memref<1x32x256xf32, #tpu.memory_space<vmem>>, vector<1x32x256xf32>,
    return
  }
  func.func @transform_0(%arg0: i32, %arg1: i32) -> (i32, i32, i32) {
    %c0_i32 = arith.constant 0 : i32
    %c0_i32_0 = arith.constant 0 : i32
    return %arg0, %c0_i32, %arg1 : i32, i32, i32
  }
  func.func @transform_1(%arg0: i32, %arg1: i32) -> (i32, i32) {
    %c0_i32 = arith.constant 0 : i32
    %c0_i32_0 = arith.constant 0 : i32
    %c0_i32_1 = arith.constant 0 : i32
    return %c0_i32, %c0_i32_0 : i32, i32
  }
  func.func @transform_2(%arg0: i32, %arg1: i32) -> (i32, i32) {
    %c0_i32 = arith.constant 0 : i32
    %c0_i32_0 = arith.constant 0 : i32
    %c0_i32_1 = arith.constant 0 : i32
    return %c0_i32, %c0_i32_0 : i32, i32
  }
  func.func @transform_3(%arg0: i32, %arg1: i32) -> (i32, i32, i32) {
    %c0_i32 = arith.constant 0 : i32
    %c0_i32_0 = arith.constant 0 : i32
    return %arg0, %c0_i32, %arg1 : i32, i32, i32
  }
}

</mosaic_0001>

<bundles_post_ra>
// kernel: layernorm_nchw.1
= control target key start
LH: loop header
LB: loop body
LE: loop exit
PB: predicated region body
PF: predicated region fallthrough
CT: control target
= control target key end

     0   :  { %s540_s12 = smov 0   ;;  %s542_s13 = smov 0   ;;  %s656_s0 = inlined_call_operand.vmem [shape: f32[2,32,256], index: 0, kind: input, shape index: {}]   ;;  %s657_s1 = inlined_call_operand.vmem [shape: f32[32,1], index: 1, kind: input, shape index: {}]   ;;  %s658_s2 = inlined_call_operand.vmem [shape: f32[32,1], index: 2, kind: input, shape index: {}]   ;;  %s659_s3 = inlined_call_operand.vmem [shape: f32[2,32,256], index: 3, kind: output, shape index: {}]  }
   0x1   :  { %s544_s14 = smov 0  }
   0x2 LB: > { %s25_s15 = sadd.s32 1, %s513_s13  ;;  %p455_p0 = scmp.ge.s32.totalorder %s517_s14, 1  ;;  %s517_s14 = sphi %s544_s14, %s13_s14   ;;  %s513_s13 = sphi %s542_s13, %s661_s13   ;;  %s509_s12 = sphi %s540_s12, %s660_s12  }
   0x3   : > { %p27_p1 = scmp.ge.s32.totalorder %s25_s15, 2  ;;  %p158_p2 = scmp.lt.s32.totalorder %s517_s14, 3 }
   0x5   : > { %s663_s15 = smov (%p27_p1, %s25_s15), 0  ;;  %p159_p3 = pnand %p455_p0, %p158_p2 }
   0x6   : > { %v278_v0 = vld [vmem:[%s657_s1 + $0x10] sm:$0xff] (!%p159_p3)  ;;  %v276_v1 = vld [vmem:[%s657_s1] sm:$0xff] (!%p159_p3)  ;;  %v519_v2 = vmov (!%p159_p3), 0   ;;  %v279_v3 = vld [vmem:[%s657_s1 + $0x18] sm:$0xff] (!%p159_p3)  ;;  %p191_p4 = scmp.lt.s32.totalorder (!%p159_p3), %s509_s12, 1 }
   0x7   : > { %162 = sbr.rel (%p159_p3) target bundleno = 152 (0x98), region = 32  ;;  %490 = vset.pattern.permute.xlu1 (!%p159_p3), %v519_v2  ;;  %489 = vset.pattern.permute.xlu0 (!%p159_p3), %v519_v2  ;;  %v277_v4 = vld [vmem:[%s657_s1 + $0x8] sm:$0xff] (!%p159_p3)  ;;  %v280_v6 = vld [vmem:[%s658_s2] sm:$0xff] (!%p159_p3)  ;;  %v283_v7 = vld [vmem:[%s658_s2 + $0x18] sm:$0xff] (!%p159_p3) }
   0x8   : > { %312 = vperm.xlu1 (!%p159_p3), %490, %v278_v0   ;;  %302 = vperm.xlu0 (!%p159_p3), %489, %v276_v1   ;;  %v281_v5 = vld [vmem:[%s658_s2 + $0x8] sm:$0xff] (!%p159_p3)  ;;  %v282_v8 = vld [vmem:[%s658_s2 + $0x10] sm:$0xff] (!%p159_p3) }
   0xc   : > { %317 = vperm.xlu1 (!%p159_p3), %490, %v279_v3   ;;  %307 = vperm.xlu0 (!%p159_p3), %489, %v277_v4  }
   0xe   : > { %s665_s12 = smov (!%p191_p4, %s509_s12), 1 }
   0xf   : > { %s462_s5 = sshll.u32 %s665_s12, 6 }
  0x10   : > { %335 = vperm.xlu1 %490, %v281_v5   ;;  %330 = vperm.xlu0 %489, %v280_v6   ;;  %s198_s8 = scalar_lea.vmem %s656_s0, %s462_s5  ;;  %s208_s11 = scalar_lea.vmem %s659_s3, %s462_s5 }
  0x11   : > { %v594_v9 = vld [vmem:[%s198_s8] sm:$0xff]  ;;  %v596_v10 = vld [vmem:[%s198_s8 + $0x10] sm:$0xff]  ;;  %v598_v11 = vld [vmem:[%s198_s8 + $0x8] sm:$0xff] }
  0x12   : > { %v600_v12 = vld [vmem:[%s198_s8 + $0x18] sm:$0xff]  ;;  %v218_v13 = vadd.f32 %v596_v10, %v594_v9  ;;  %v236_v14 = vmul.f32 %v594_v9, %v594_v9  ;;  %v238_v15 = vmul.f32 %v596_v10, %v596_v10  ;;  %v608_v16 = vld [vmem:[%s198_s8 + $0x20] sm:$0xff]  ;;  %v237_v18 = vmul.f32 %v598_v11, %v598_v11  ;;  %v616_v20 = vld [vmem:[%s198_s8 + $0x28] sm:$0xff] }
  0x13   : > { %v227_v17 = vadd.f32 %v600_v12, %v598_v11  ;;  %v239_v19 = vmul.f32 %v600_v12, %v600_v12  ;;  %v240_v22 = vmul.f32 %v608_v16, %v608_v16  ;;  %v621_v24 = vld [vmem:[%s198_s8 + $0x30] sm:$0xff]  ;;  %v241_v26 = vmul.f32 %v616_v20, %v616_v20  ;;  %v626_v28 = vld [vmem:[%s198_s8 + $0x38] sm:$0xff] }
  0x14   : > { %345 = vperm.xlu1 %490, %v283_v7   ;;  %340 = vperm.xlu0 %489, %v282_v8   ;;  %v219_v21 = vadd.f32 %v218_v13, %v608_v16  ;;  %v244_v23 = vadd.f32 %v238_v15, %v236_v14  ;;  %v242_v30 = vmul.f32 %v621_v24, %v621_v24 }
  0x15   : > { %v228_v25 = vadd.f32 %v227_v17, %v616_v20  ;;  %v253_v27 = vadd.f32 %v239_v19, %v237_v18  ;;  %v243_v33 = vmul.f32 %v626_v28, %v626_v28 }
  0x16   : > { %v220_v29 = vadd.f32 %v219_v21, %v621_v24  ;;  %v245_v31 = vadd.f32 %v244_v23, %v240_v22 }
  0x17   : > { %v229_v32 = vadd.f32 %v228_v25, %v626_v28  ;;  %v254_v34 = vadd.f32 %v253_v27, %v241_v26 }
  0x18   : > { %v221_v35 = vrot.slane %v220_v29, 4  ;;  %v246_v36 = vadd.f32 %v245_v31, %v242_v30 }
  0x19   : > { %v230_v37 = vrot.slane %v229_v32, 4  ;;  %v255_v38 = vadd.f32 %v254_v34, %v243_v33 }
  0x1a   : > { %v222_v39 = vadd.f32 %v221_v35, %v220_v29  ;;  %v247_v40 = vrot.slane %v246_v36, 4 }
  0x1b   : > { %v231_v41 = vadd.f32 %v230_v37, %v229_v32  ;;  %v256_v42 = vrot.slane %v255_v38, 4 }
  0x1c   : > { %v223_v43 = vrot.slane %v222_v39, 2  ;;  %v248_v44 = vadd.f32 %v247_v40, %v246_v36 }
  0x1d   : > { %v232_v45 = vrot.slane %v231_v41, 2  ;;  %v257_v46 = vadd.f32 %v256_v42, %v255_v38 }
  0x1e   : > { %v224_v47 = vadd.f32 %v223_v43, %v222_v39  ;;  %v249_v48 = vrot.slane %v248_v44, 2 }
  0x1f   : > { %v233_v49 = vadd.f32 %v232_v45, %v231_v41  ;;  %v258_v50 = vrot.slane %v257_v46, 2 }
  0x20   : > { %v225_v51 = vrot.slane %v224_v47, 1  ;;  %v250_v52 = vadd.f32 %v249_v48, %v248_v44 }
  0x21   : > { %v234_v53 = vrot.slane %v233_v49, 1  ;;  %v259_v54 = vadd.f32 %v258_v50, %v257_v46 }
  0x22   : > { %v226_v55 = vadd.f32 %v225_v51, %v224_v47  ;;  %v251_v56 = vrot.slane %v250_v52, 1 }
  0x23   : > { %v235_v57 = vadd.f32 %v234_v53, %v233_v49  ;;  %v260_v58 = vrot.slane %v259_v54, 1 }
  0x24   : > { %v252_v59 = vadd.f32 %v251_v56, %v250_v52  ;;  %v262_v60 = vmul.f32 0.03125, %v226_v55 }
  0x25   : > { %v261_v61 = vadd.f32 %v260_v58, %v259_v54  ;;  %v263_v62 = vmul.f32 0.03125, %v235_v57 }
  0x26   : > { %v264_v63 = vmul.f32 0.03125, %v252_v59  ;;  %v266_v0 = vmul.f32 %v262_v60, %v262_v60  ;;  %v284_v14 = vsub.f32 %v594_v9, %v262_v60  ;;  %v286_v17 = vsub.f32 %v596_v10, %v262_v60 }
  0x27   : > { %v265_v1 = vmul.f32 0.03125, %v261_v61  ;;  %v267_v2 = vmul.f32 %v263_v62, %v263_v62  ;;  %v285_v15 = vsub.f32 %v598_v11, %v263_v62  ;;  %v287_v18 = vsub.f32 %v600_v12, %v263_v62 }
  0x28   : > { %v268_v3 = vsub.f32 %v264_v63, %v266_v0  ;;  %v288_v23 = vsub.f32 %v608_v16, %v262_v60  ;;  %v289_v25 = vsub.f32 %v616_v20, %v263_v62  ;;  %v290_v26 = vsub.f32 %v621_v24, %v262_v60 }
  0x29   : > { %v269_v4 = vsub.f32 %v265_v1, %v267_v2  ;;  %v291_v27 = vsub.f32 %v626_v28, %v263_v62 }
  0x2a   : > { %v270_v5 = vmax.f32 %v268_v3, 0.0 }
  0x2b   : > { %v271_v6 = vmax.f32 %v269_v4, 0.0 }
  0x2c   : > { %v272_v7 = vadd.f32 1e-05, %v270_v5 }
  0x2d   : > { %v273_v8 = vadd.f32 1e-05, %v271_v6 }
  0x2e   : > { %491 = vrsqrt.f32 %v272_v7 }
  0x2f   : > { %493 = vrsqrt.f32 %v273_v8 }
  0x38   : > { %v492_v13 = vpop.eup %491 }
  0x39   : > { %v494_v19 = vpop.eup %493  ;;  %v292_v29 = vmul.f32 %v492_v13, %v284_v14  ;;  %v294_v30 = vmul.f32 %v492_v13, %v286_v17  ;;  %v296_v32 = vmul.f32 %v492_v13, %v288_v23  ;;  %v298_v33 = vmul.f32 %v492_v13, %v290_v26 }
  0x3a   : > { %v293_v9 = vmul.f32 %v494_v19, %v285_v15  ;;  %v295_v11 = vmul.f32 %v494_v19, %v287_v18  ;;  %v297_v12 = vmul.f32 %v494_v19, %v289_v25  ;;  %v299_v34 = vmul.f32 %v494_v19, %v291_v27 }
  0x87   : > { %v313_v21 = vpop.permute.xlu1 %312  ;;  %v303_v22 = vpop.permute.xlu0 %302 }
  0x88   : > { %v320_v35 = vmul.f32 %v303_v22, %v292_v29  ;;  %v321_v36 = vmul.f32 %v303_v22, %v293_v9  ;;  %v324_v41 = vmul.f32 %v313_v21, %v296_v32  ;;  %v325_v42 = vmul.f32 %v313_v21, %v297_v12 }
  0x8b   : > { %v318_v31 = vpop.permute.xlu1 %317  ;;  %v308_v10 = vpop.permute.xlu0 %307 }
  0x8c   : > { %v322_v16 = vmul.f32 %v308_v10, %v294_v30  ;;  %v323_v37 = vmul.f32 %v308_v10, %v295_v11  ;;  %v326_v43 = vmul.f32 %v318_v31, %v298_v33  ;;  %v327_v44 = vmul.f32 %v318_v31, %v299_v34 }
  0x8f   : > { %v336_v20 = vpop.permute.xlu1 %335  ;;  %v331_v24 = vpop.permute.xlu0 %330 }
  0x90   : > { %v350_v28 = vadd.f32 %v336_v20, %v322_v16  ;;  %v351_v38 = vadd.f32 %v336_v20, %v323_v37  ;;  %v348_v39 = vadd.f32 %v331_v24, %v320_v35  ;;  %v349_v40 = vadd.f32 %v331_v24, %v321_v36 }
  0x92   : > { %358 = vst [vmem:[%s208_s11 + $0x10] sm:$0xff] %v350_v28  ;;  %359 = vst [vmem:[%s208_s11 + $0x18] sm:$0xff] %v351_v38 }
  0x93   : > { %356 = vst [vmem:[%s208_s11] sm:$0xff] %v348_v39  ;;  %357 = vst [vmem:[%s208_s11 + $0x8] sm:$0xff] %v349_v40  ;;  %v346_v45 = vpop.permute.xlu1 %345  ;;  %v341_v46 = vpop.permute.xlu0 %340 }
  0x94   : > { %v354_v47 = vadd.f32 %v346_v45, %v326_v43  ;;  %v355_v48 = vadd.f32 %v346_v45, %v327_v44  ;;  %v352_v49 = vadd.f32 %v341_v46, %v324_v41  ;;  %v353_v50 = vadd.f32 %v341_v46, %v325_v42 }
  0x96   : > { %362 = vst [vmem:[%s208_s11 + $0x30] sm:$0xff] %v354_v47  ;;  %363 = vst [vmem:[%s208_s11 + $0x38] sm:$0xff] %v355_v48 }
  0x97   : > { %360 = vst [vmem:[%s208_s11 + $0x20] sm:$0xff] %v352_v49  ;;  %361 = vst [vmem:[%s208_s11 + $0x28] sm:$0xff] %v353_v50 }
  0x98 PF: > { %s13_s14 = sadd.s32 1, %s517_s14   ;;  %s660_s12 = smov %s513_s13 }
  0x99   : > { %p10_p5 = scmp.ge.s32.totalorder %s13_s14, 4   ;;  %s661_s13 = smov %s663_s15 }
  0x9b   :  { %12 = sbr.rel (!%p10_p5) target bundleno = 2 (0x2), region = 62 }

</bundles_post_ra>
